<compile_context>
chip_gen: v5e
topology: v5e:2x2
jax: 0.10.0
libtpu: 0.0.40
codegen_flags: <defaults>
</compile_context>

<pallas_src>
import functools

import jax
import jax.numpy as jnp
from jax.experimental import pallas as pl
from jax.experimental.pallas import tpu as pltpu

FEAT_DIM = 512
LANE = 128
SUBLANE = 8
MAX_THW = 8192          # cap on spatial chunk (bounds in-kernel unroll to <= 64 lane-tiles)


def _round_up(x, m):
    return ((x + m - 1) // m) * m


def _cdiv(a, b):
    return (a + b - 1) // b


def _vmem_capacity_bytes():
    """Generation-aware VMEM capacity (per TensorCore). Conservative fallback = v7x 64 MiB."""
    try:
        return int(pltpu.get_tpu_info().vmem_capacity_bytes)
    except Exception:
        return 64 * 1024 * 1024


def _vmem_bytes(tb, thw, c, nc_pad):
    """Working-set estimate incl. layout padding (sublane->8, lane->128) and double buffering."""
    c8 = _round_up(c, SUBLANE)
    thw_l = _round_up(thw, LANE)
    x_b = 2 * tb * c8 * thw_l * 4                                # double-buffered streaming x
    w_b = 2 * (c8 * FEAT_DIM * 2 + FEAT_DIM * nc_pad * 2)        # resident bf16 weights
    b_b = 2 * (SUBLANE * FEAT_DIM + SUBLANE * nc_pad) * 4        # resident biases
    out_b = 2 * tb * nc_pad * 4                                  # output block
    acc_b = tb * c8 * LANE * 4                                   # lane-partial accumulator
    return x_b + w_b + b_b + out_b + acc_b


def _choose_tiles(B, C, HW, nc_pad, budget):
    """Pick (TB, THW): TB at 8-row granularity, THW lane-friendly, working set <= budget."""
    TB = min(_round_up(B, SUBLANE), 256)
    # v7x: keep >= 2 batch tiles so dimension_semantics=("parallel", ...) uses both TensorCores.
    if B > SUBLANE and _cdiv(_round_up(B, SUBLANE), TB) < 2:
        TB = max(SUBLANE, _round_up(_cdiv(B, 2), SUBLANE))
    # Shrink TB until even a minimal (LANE-wide) spatial chunk fits the budget.
    while TB > SUBLANE and _vmem_bytes(TB, LANE, C, nc_pad) > budget:
        TB = max(SUBLANE, _round_up(TB // 2, SUBLANE))
    assert _vmem_bytes(TB, LANE, C, nc_pad) <= budget, (
        "VMEM budget exceeded even at minimal tile; "
        "TODO(synk): add a channel-tiling grid axis for very large channel counts")

    c8 = _round_up(C, SUBLANE)
    fixed = _vmem_bytes(TB, 0, C, nc_pad)                        # everything except x blocks
    avail = budget - fixed
    max_thw = (avail // (2 * TB * c8 * 4)) // LANE * LANE
    max_thw = max(LANE, min(max_thw, MAX_THW))

    if _round_up(HW, LANE) <= max_thw:
        return TB, HW                                            # single chunk, no spatial pad
    THW = max_thw
    for cand in range(max_thw, LANE - 1, -LANE):                 # prefer a divisor of HW: no pad
        if HW % cand == 0:
            THW = cand
            break
    return TB, THW


def joint_network_kernel(x_ref, wf_ref, bf_ref, wc_ref, bc_ref, out_ref, acc_ref,
                         *, n_sub, rem, inv_hw):
    """Fused forward: mean-pool -> feature Linear+ReLU -> classifier Linear.

    x_ref : (TB, C, THW)      float32   NCHW input, spatial dims flattened & chunked
    wf_ref: (C, 512)          bfloat16  feature projection (unscaled)
    bf_ref: (1, 512)          float32
    wc_ref: (512, NCp)        bfloat16  classifier weight, zero-padded to lane-dense NCp
    bc_ref: (1, NCp)          float32
    out_ref: (TB, NCp)        float32
    acc_ref: (TB, C, 128)     float32   lane-partial spatial-sum accumulator (persists over k)
    """
    k = pl.program_id(1)

    @pl.when(k == 0)
    def _init():
        acc_ref[...] = jnp.zeros_like(acc_ref)

    # Streaming phase: VPU-only accumulation of lane-aligned 128-wide partial sums.
    # (No XLU cross-lane reduce per grid step -> full-bandwidth streaming on v7x.)
    if n_sub:
        part = x_ref[:, :, 0:LANE]
        for s in range(1, n_sub):
            part = part + x_ref[:, :, s * LANE:(s + 1) * LANE]
        acc_ref[...] += part
    if rem:
        acc_ref[:, :, :rem] += x_ref[:, :, n_sub * LANE:]

    @pl.when(k == pl.num_programs(1) - 1)
    def _finalize():
        # Single cross-lane collapse + f32 mean scale (matches PyTorch f32 mean-pool).
        pooled = jnp.sum(acc_ref[...], axis=-1) * inv_hw                     # (TB, C) f32
        # Feature head: Linear(C -> 512) + ReLU. bf16 operands, f32 MXU accumulation.
        feat = jnp.dot(pooled.astype(jnp.bfloat16), wf_ref[...],
                       preferred_element_type=jnp.float32) + bf_ref[...]
        feat = jnp.maximum(feat, 0.0)                                        # (TB, 512) f32
        # classifier = nn.Linear(512, numclass) (padded to NCp lanes).
        logits = jnp.dot(feat.astype(jnp.bfloat16), wc_ref[...],
                         preferred_element_type=jnp.float32) + bc_ref[...]
        out_ref[...] = logits                                                # lane-dense store


@jax.jit
def joint_network_forward(x_nchw, params):
    """x_nchw: (B, C, H, W) float32. Returns (B, numclass) logits."""
    B, C, H, W = x_nchw.shape
    HW = H * W
    numclass = params["cls_w"].shape[0]
    nc_pad = _round_up(numclass, LANE)

    vmem_cap = _vmem_capacity_bytes()
    vmem_limit = (vmem_cap * 3) // 4          # e.g. 48 MiB on v7x, 96 MiB on v5e/v6e
    budget = (vmem_cap * 2) // 5              # working-set target, leaves compiler headroom

    TB, THW = _choose_tiles(B, C, HW, nc_pad, budget)
    B_pad = _round_up(B, TB)
    n_k = _cdiv(HW, THW)
    HW_pad = n_k * THW

    # ---- layout plumbing (one-time, outside the kernel) ----
    x_flat = x_nchw.reshape(B, C, HW)
    if B_pad != B or HW_pad != HW:                       # pad only when needed (zero pad: sum-safe)
        x_flat = jnp.pad(x_flat, ((0, B_pad - B), (0, 0), (0, HW_pad - HW)))

    # TODO(synk): if the producer can emit bf16 activations, stream x as bf16 (~2x less HBM traffic).
    wf_t = params["feat_w"].T.astype(jnp.bfloat16)                               # (C, 512)
    bf = params["feat_b"].reshape(1, FEAT_DIM).astype(jnp.float32)               # (1, 512)
    wc_t = jnp.pad(params["cls_w"].T, ((0, 0), (0, nc_pad - numclass))).astype(jnp.bfloat16)
    bc = jnp.pad(params["cls_b"], (0, nc_pad - numclass)).reshape(1, nc_pad).astype(jnp.float32)

    kernel = functools.partial(joint_network_kernel,
                               n_sub=THW // LANE, rem=THW % LANE, inv_hw=1.0 / HW)

    grid = (B_pad // TB, n_k)

    cost = pl.CostEstimate(
        flops=2 * B_pad * (C * FEAT_DIM + FEAT_DIM * nc_pad) + B_pad * C * HW_pad,
        transcendentals=0,
        bytes_accessed=(x_flat.size * 4 + wf_t.size * 2 + wc_t.size * 2
                        + bf.size * 4 + bc.size * 4 + B_pad * nc_pad * 4),
    )

    out_padded = pl.pallas_call(
        kernel,
        out_shape=jax.ShapeDtypeStruct((B_pad, nc_pad), jnp.float32),
        grid_spec=pltpu.PrefetchScalarGridSpec(
            num_scalar_prefetch=0,
            grid=grid,
            in_specs=[
                pl.BlockSpec((TB, C, THW), lambda i, k: (i, 0, k)),     # x: streams
                pl.BlockSpec((C, FEAT_DIM), lambda i, k: (0, 0)),       # feat W: resident
                pl.BlockSpec((1, FEAT_DIM), lambda i, k: (0, 0)),       # feat b: resident
                pl.BlockSpec((FEAT_DIM, nc_pad), lambda i, k: (0, 0)),  # cls W: resident
                pl.BlockSpec((1, nc_pad), lambda i, k: (0, 0)),         # cls b: resident
            ],
            out_specs=pl.BlockSpec((TB, nc_pad), lambda i, k: (i, 0)),
            scratch_shapes=[pltpu.VMEM((TB, C, LANE), jnp.float32)],    # lane-partial accumulator
        ),
        compiler_params=pltpu.CompilerParams(
            dimension_semantics=("parallel", "arbitrary"),
            vmem_limit_bytes=int(vmem_limit),
        ),
        cost_estimate=cost,
    )(x_flat, wf_t, bf, wc_t, bc)

    return out_padded[:B, :numclass]


def init_params(key, in_channels, numclass, feat_dim=FEAT_DIM):
    """Deterministic PyTorch-style (uniform +-1/sqrt(fan_in)) init, weights stored (out, in)."""
    k1, k2, k3, k4 = jax.random.split(key, 4)
    bnd_f = 1.0 / jnp.sqrt(in_channels)
    bnd_c = 1.0 / jnp.sqrt(feat_dim)
    return {
        # synthetic feature extractor head: Linear(in_channels -> 512)
        "feat_w": jax.random.uniform(k1, (feat_dim, in_channels), jnp.float32, -bnd_f, bnd_f),
        "feat_b": jax.random.uniform(k2, (feat_dim,), jnp.float32, -bnd_f, bnd_f),
        # self.classifier = nn.Linear(512, numclass)
        "cls_w": jax.random.uniform(k3, (numclass, feat_dim), jnp.float32, -bnd_c, bnd_c),
        "cls_b": jax.random.uniform(k4, (numclass,), jnp.float32, -bnd_c, bnd_c),
        # self.fc = nn.Linear(512, numclass * 4) exists in __init__ but is unused in forward.
    }


if __name__ == "__main__":
    B, C, H, W = 2, 4, 16, 16
    numclass = 10

    key = jax.random.PRNGKey(0)
    kx, kp = jax.random.split(key)
    x = jax.random.normal(kx, (B, C, H, W), dtype=jnp.float32)
    params = init_params(kp, C, numclass)

    out = jax.block_until_ready(joint_network_forward(x, params))
    assert out.shape == (B, numclass)

    HW = H * W
    # Reference 1: identical numerics path (f32 mean-pool, bf16 matmul operands) -> tight tol.
    pooled = (jnp.sum(x.reshape(B, C, HW), axis=-1) * (1.0 / HW)).astype(jnp.bfloat16)
    wf_bf = params["feat_w"].T.astype(jnp.bfloat16)
    feat_ref = jnp.maximum(
        jnp.dot(pooled, wf_bf, preferred_element_type=jnp.float32) + params["feat_b"], 0.0)
    ref_bf16 = jnp.dot(feat_ref.astype(jnp.bfloat16),
                       params["cls_w"].T.astype(jnp.bfloat16),
                       preferred_element_type=jnp.float32) + params["cls_b"]
    assert jnp.allclose(out, ref_bf16, atol=1e-3, rtol=1e-3)

    # Reference 2: pure-f32 module semantics (mean-pool -> Linear+ReLU -> classifier) -> loose tol.
    pooled_f32 = jnp.mean(x.reshape(B, C, HW), axis=-1)
    feat_f32 = jnp.maximum(pooled_f32 @ params["feat_w"].T + params["feat_b"], 0.0)
    ref_f32 = feat_f32 @ params["cls_w"].T + params["cls_b"]
    assert jnp.allclose(out, ref_f32, atol=2e-2, rtol=2e-2)

    print("KERNEL_OK")
</pallas_src>

<mosaic_0001>
module attributes {stable_mosaic.version = 11 : i64} {
  func.func @joint_network_kernel(%arg0: i32, %arg1: i32, %arg2: memref<8x4x256xf32, #tpu.memory_space<vmem>>, %arg3: memref<4x512xbf16, #tpu.memory_space<vmem>>, %arg4: memref<1x512xf32, #tpu.memory_space<vmem>>, %arg5: memref<512x128xbf16, #tpu.memory_space<vmem>>, %arg6: memref<1x128xf32, #tpu.memory_space<vmem>>, %arg7: memref<8x128xf32, #tpu.memory_space<vmem>>, %arg8: memref<8x4x128xf32, #tpu.memory_space<vmem>>) attributes {dimension_semantics = [#tpu.dimension_semantics<parallel>, #tpu.dimension_semantics<arbitrary>], iteration_bounds = array<i64: 1, 1>, scalar_prefetch = 0 : i64, scratch_operands = 1 : i64, tpu.core_type = #tpu.core_type<tc>, window_params = [{transform_indices = @transform_0, window_bounds = array<i64: 8, 4, 256>}, {pipeline_mode = #tpu.pipeline_mode<synchronous>, transform_indices = @transform_1, window_bounds = array<i64: 4, 512>}, {pipeline_mode = #tpu.pipeline_mode<synchronous>, transform_indices = @transform_2, window_bounds = array<i64: 1, 512>}, {pipeline_mode = #tpu.pipeline_mode<synchronous>, transform_indices = @transform_3, window_bounds = array<i64: 512, 128>}, {pipeline_mode = #tpu.pipeline_mode<synchronous>, transform_indices = @transform_4, window_bounds = array<i64: 1, 128>}, {transform_indices = @transform_5, window_bounds = array<i64: 8, 128>}]} {
    %c0_i32 = arith.constant 0 : i32
    %0 = arith.cmpi eq, %arg1, %c0_i32 : i32
    %1 = arith.extui %0 : i1 to i32
    %c0_i32_0 = arith.constant 0 : i32
    %2 = arith.cmpi ne, %1, %c0_i32_0 : i32
    scf.if %2 {
      %cst = arith.constant 0.000000e+00 : f32
      %12 = vector.broadcast %cst : f32 to vector<8x4x128xf32>
      %c0_13 = arith.constant 0 : index
      %c0_14 = arith.constant 0 : index
      %c0_15 = arith.constant 0 : index
      %13 = vector.load %arg8[%c0_13, %c0_14, %c0_15] : memref<8x4x128xf32, #tpu.memory_space<vmem>>, vector<8x4x128xf32>
      tpu.vector_store %arg8[%c0_13, %c0_14, %c0_15], %12 {strides = array<i32>} : memref<8x4x128xf32, #tpu.memory_space<vmem>>, vector<8x4x128xf32>,
    } else {
    }
    %c0 = arith.constant 0 : index
    %c0_1 = arith.constant 0 : index
    %c0_2 = arith.constant 0 : index
    %3 = vector.load %arg2[%c0, %c0_1, %c0_2] : memref<8x4x256xf32, #tpu.memory_space<vmem>>, vector<8x4x128xf32>
    %c0_3 = arith.constant 0 : index
    %c0_4 = arith.constant 0 : index
    %c128 = arith.constant 128 : index
    %4 = vector.load %arg2[%c0_3, %c0_4, %c128] : memref<8x4x256xf32, #tpu.memory_space<vmem>>, vector<8x4x128xf32>
    %5 = arith.addf %3, %4 : vector<8x4x128xf32>
    %c0_5 = arith.constant 0 : index
    %c0_6 = arith.constant 0 : index
    %c0_7 = arith.constant 0 : index
    %6 = vector.load %arg8[%c0_5, %c0_6, %c0_7] : memref<8x4x128xf32, #tpu.memory_space<vmem>>, vector<8x4x128xf32>
    %7 = arith.addf %6, %5 : vector<8x4x128xf32>
    %c0_8 = arith.constant 0 : index
    %c0_9 = arith.constant 0 : index
    %c0_10 = arith.constant 0 : index
    %8 = vector.load %arg8[%c0_8, %c0_9, %c0_10] : memref<8x4x128xf32, #tpu.memory_space<vmem>>, vector<8x4x128xf32>
    tpu.vector_store %arg8[%c0_8, %c0_9, %c0_10], %7 {strides = array<i32>} : memref<8x4x128xf32, #tpu.memory_space<vmem>>, vector<8x4x128xf32>,
    %c0_i32_11 = arith.constant 0 : i32
    %9 = arith.cmpi eq, %arg1, %c0_i32_11 : i32
    %10 = arith.extui %9 : i1 to i32
    %c0_i32_12 = arith.constant 0 : i32
    %11 = arith.cmpi ne, %10, %c0_i32_12 : i32
    scf.if %11 {
      %c0_13 = arith.constant 0 : index
      %c0_14 = arith.constant 0 : index
      %c0_15 = arith.constant 0 : index
      %12 = vector.load %arg8[%c0_13, %c0_14, %c0_15] : memref<8x4x128xf32, #tpu.memory_space<vmem>>, vector<8x4x128xf32>
      %cst = arith.constant dense<0.000000e+00> : vector<8x4xf32>
      %13 = vector.multi_reduction <add>, %12, %cst [2] : vector<8x4x128xf32> to vector<8x4xf32>
      %cst_16 = arith.constant 3.906250e-03 : f32
      %14 = vector.broadcast %cst_16 : f32 to vector<8x4xf32>
      %15 = arith.mulf %13, %14 : vector<8x4xf32>
      %16 = arith.truncf %15 : vector<8x4xf32> to vector<8x4xbf16>
      %c0_17 = arith.constant 0 : index
      %c0_18 = arith.constant 0 : index
      %17 = vector.load %arg3[%c0_17, %c0_18] : memref<4x512xbf16, #tpu.memory_space<vmem>>, vector<4x512xbf16>
      %cst_19 = arith.constant dense<0.000000e+00> : vector<8x512xf32>
      %18 = tpu.matmul %16, %17, %cst_19 {dimension_numbers = #tpu.dot_dimension_numbers<[1], [0], [0], [1], [0, 0, 1, 1], [], []>} : vector<8x4xbf16>, vector<4x512xbf16>, vector<8x512xf32> -> vector<8x512xf32>
      %c0_20 = arith.constant 0 : index
      %c0_21 = arith.constant 0 : index
      %19 = vector.load %arg4[%c0_20, %c0_21] : memref<1x512xf32, #tpu.memory_space<vmem>>, vector<1x512xf32>
      %20 = vector.broadcast %19 : vector<1x512xf32> to vector<8x512xf32>
      %21 = arith.addf %18, %20 : vector<8x512xf32>
      %cst_22 = arith.constant 0.000000e+00 : f32
      %22 = vector.broadcast %cst_22 : f32 to vector<8x512xf32>
      %23 = arith.maximumf %21, %22 : vector<8x512xf32>
      %24 = arith.truncf %23 : vector<8x512xf32> to vector<8x512xbf16>
      %c0_23 = arith.constant 0 : index
      %c0_24 = arith.constant 0 : index
      %25 = vector.load %arg5[%c0_23, %c0_24] : memref<512x128xbf16, #tpu.memory_space<vmem>>, vector<512x128xbf16>
      %cst_25 = arith.constant dense<0.000000e+00> : vector<8x128xf32>
      %26 = tpu.matmul %24, %25, %cst_25 {dimension_numbers = #tpu.dot_dimension_numbers<[1], [0], [0], [1], [0, 0, 1, 1], [], []>} : vector<8x512xbf16>, vector<512x128xbf16>, vector<8x128xf32> -> vector<8x128xf32>
      %c0_26 = arith.constant 0 : index
      %c0_27 = arith.constant 0 : index
      %27 = vector.load %arg6[%c0_26, %c0_27] : memref<1x128xf32, #tpu.memory_space<vmem>>, vector<1x128xf32>
      %28 = vector.broadcast %27 : vector<1x128xf32> to vector<8x128xf32>
      %29 = arith.addf %26, %28 : vector<8x128xf32>
      %c0_28 = arith.constant 0 : index
      %c0_29 = arith.constant 0 : index
      %30 = vector.load %arg7[%c0_28, %c0_29] : memref<8x128xf32, #tpu.memory_space<vmem>>, vector<8x128xf32>
      tpu.vector_store %arg7[%c0_28, %c0_29], %29 {strides = array<i32>} : memref<8x128xf32, #tpu.memory_space<vmem>>, vector<8x128xf32>,
    } else {
    }
    return
  }
  func.func @transform_0(%arg0: i32, %arg1: i32) -> (i32, i32, i32) {
    %c0_i32 = arith.constant 0 : i32
    %c0_i32_0 = arith.constant 0 : i32
    return %arg0, %c0_i32, %arg1 : i32, i32, i32
  }
  func.func @transform_1(%arg0: i32, %arg1: i32) -> (i32, i32) {
    %c0_i32 = arith.constant 0 : i32
    %c0_i32_0 = arith.constant 0 : i32
    %c0_i32_1 = arith.constant 0 : i32
    return %c0_i32, %c0_i32_0 : i32, i32
  }
  func.func @transform_2(%arg0: i32, %arg1: i32) -> (i32, i32) {
    %c0_i32 = arith.constant 0 : i32
    %c0_i32_0 = arith.constant 0 : i32
    %c0_i32_1 = arith.constant 0 : i32
    return %c0_i32, %c0_i32_0 : i32, i32
  }
  func.func @transform_3(%arg0: i32, %arg1: i32) -> (i32, i32) {
    %c0_i32 = arith.constant 0 : i32
    %c0_i32_0 = arith.constant 0 : i32
    %c0_i32_1 = arith.constant 0 : i32
    return %c0_i32, %c0_i32_0 : i32, i32
  }
  func.func @transform_4(%arg0: i32, %arg1: i32) -> (i32, i32) {
    %c0_i32 = arith.constant 0 : i32
    %c0_i32_0 = arith.constant 0 : i32
    %c0_i32_1 = arith.constant 0 : i32
    return %c0_i32, %c0_i32_0 : i32, i32
  }
  func.func @transform_5(%arg0: i32, %arg1: i32) -> (i32, i32) {
    %c0_i32 = arith.constant 0 : i32
    %c0_i32_0 = arith.constant 0 : i32
    return %arg0, %c0_i32 : i32, i32
  }
}

</mosaic_0001>

<bundles_post_ra>
// kernel: joint_network_forward.1
= control target key start
LH: loop header
LB: loop body
LE: loop exit
PB: predicated region body
PF: predicated region fallthrough
CT: control target
= control target key end

     0   :  { %v747_v0 = vmov 0.0   ;;  %vm92_vm0 = vcmask 1043456   ;;  %vm195_vm1 = vcmask 1041408   ;;  %vm170_vm2 = vcmask 1041409   ;;  %s954_s0 = inlined_call_operand.vmem [shape: f32[8,4,256], index: 0, kind: input, shape index: {}]   ;;  %s955_s1 = inlined_call_operand.vmem [shape: bf16[4,512], index: 1, kind: input, shape index: {}]   ;;  %s956_s3 = inlined_call_operand.vmem [shape: bf16[512,128], index: 3, kind: input, shape index: {}]   ;;  %s957_s4 = inlined_call_operand.vmem [shape: f32[1,128], index: 4, kind: input, shape index: {}]   ;;  %s958_s2 = inlined_call_operand.vmem [shape: f32[1,512], index: 2, kind: input, shape index: {}]   ;;  %s959_s5 = inlined_call_operand.vmem [shape: f32[8,128], index: 5, kind: output, shape index: {}]  }
   0x1   :  { %25 = vst [vmem:[#allocation2] sm:$0xf] %v747_v0  ;;  %v33_v1 = vld [vmem:[%s954_s0] sm:$0xf]  ;;  %v41_v2 = vld [vmem:[%s954_s0 + $0x4] sm:$0xf] }
   0x2   :  { %26 = vst [vmem:[#allocation2 + $0x4] sm:$0xf] %v747_v0  ;;  %v35_v3 = vld [vmem:[%s954_s0 + $0x10] sm:$0xf]  ;;  %v43_v4 = vld [vmem:[%s954_s0 + $0x14] sm:$0xf]  ;;  %v49_v8 = vadd.f32 %v41_v2, %v33_v1 }
   0x3   :  { %27 = vst [vmem:[#allocation2 + $0x8] sm:$0xf] %v747_v0  ;;  %v37_v5 = vld [vmem:[%s954_s0 + $0x20] sm:$0xf]  ;;  %v34_v6 = vld [vmem:[%s954_s0 + $0x8] sm:$0xf]  ;;  %v51_v14 = vadd.f32 %v43_v4, %v35_v3 }
   0x4   :  { %28 = vst [vmem:[#allocation2 + $0xc] sm:$0xf] %v747_v0  ;;  %v42_v7 = vld [vmem:[%s954_s0 + $0xc] sm:$0xf]  ;;  %v36_v9 = vld [vmem:[%s954_s0 + $0x18] sm:$0xf] }
   0x5   :  { %29 = vst [vmem:[#allocation2 + $0x10] sm:$0xf] %v747_v0  ;;  %v44_v10 = vld [vmem:[%s954_s0 + $0x1c] sm:$0xf]  ;;  %v45_v11 = vld [vmem:[%s954_s0 + $0x24] sm:$0xf]  ;;  %v50_v12 = vadd.f32 %v42_v7, %v34_v6 }
   0x6   :  { %30 = vst [vmem:[#allocation2 + $0x14] sm:$0xf] %v747_v0  ;;  %v38_v13 = vld [vmem:[%s954_s0 + $0x28] sm:$0xf]  ;;  %v46_v15 = vld [vmem:[%s954_s0 + $0x2c] sm:$0xf]  ;;  %v52_v18 = vadd.f32 %v44_v10, %v36_v9  ;;  %v53_v21 = vadd.f32 %v45_v11, %v37_v5 }
   0x7   :  { %31 = vst [vmem:[#allocation2 + $0x18] sm:$0xf] %v747_v0  ;;  %v39_v16 = vld [vmem:[%s954_s0 + $0x30] sm:$0xf]  ;;  %v47_v19 = vld [vmem:[%s954_s0 + $0x34] sm:$0xf]  ;;  %v54_v27 = vadd.f32 %v46_v15, %v38_v13 }
   0x8   :  { %v57_v17 = vld [vmem:[#allocation2] sm:$0xf]  ;;  %32 = vst [vmem:[#allocation2 + $0x1c] sm:$0xf] %v747_v0  ;;  %v40_v23 = vld [vmem:[%s954_s0 + $0x38] sm:$0xf]  ;;  %v55_v30 = vadd.f32 %v47_v19, %v39_v16 }
   0x9   :  { %v65_v20 = vadd.f32 %v57_v17, %v49_v8  ;;  %v58_v22 = vld [vmem:[#allocation2 + $0x4] sm:$0xf]  ;;  %v48_v24 = vld [vmem:[%s954_s0 + $0x3c] sm:$0xf]  ;;  %v133_v57 = vld [vmem:[%s955_s1] sm:$0xff]  ;;  %v160_v17 = vlaneseq  ;;  %vm172_vm3 = vcmask 1042434  }
   0xa   :  { %v59_v25 = vld [vmem:[#allocation2 + $0x8] sm:$0xf]  ;;  %v66_v26 = vadd.f32 %v58_v22, %v50_v12  ;;  %v56_v33 = vadd.f32 %v48_v24, %v40_v23  ;;  %186 = vst [vmem:[#allocation1] ss:$4 sm:$0xff] %v133_v57  ;;  %v720_v2 = vld [vmem:[%s956_s3 + $0x38] sm:$0xff]  ;;  %v718_v15 = vld [vmem:[%s956_s3 + $0x28] sm:$0xff] }
   0xb   :  { %73 = vst [vmem:[#allocation2] sm:$0xf] %v65_v20  ;;  %v67_v28 = vadd.f32 %v59_v25, %v51_v14  ;;  %v60_v29 = vld [vmem:[#allocation2 + $0xc] sm:$0xf]  ;;  %v728_v3 = vld [vmem:[%s956_s3 + $0x78] sm:$0xff]  ;;  %v726_v16 = vld [vmem:[%s956_s3 + $0x68] sm:$0xff] }
   0xc   :  { %v61_v31 = vld [vmem:[#allocation2 + $0x10] sm:$0xf]  ;;  %74 = vst [vmem:[#allocation2 + $0x4] sm:$0xf] %v66_v26  ;;  %v68_v32 = vadd.f32 %v60_v29, %v52_v18  ;;  %v719_v7 = vld [vmem:[%s956_s3 + $0x30] sm:$0xff]  ;;  %v734_v19 = vld [vmem:[%s956_s3 + $0xa8] sm:$0xff] }
   0xd   :  { %75 = vst [vmem:[#allocation2 + $0x8] sm:$0xf] %v67_v28  ;;  %v69_v34 = vadd.f32 %v61_v31, %v53_v21  ;;  %v62_v35 = vld [vmem:[#allocation2 + $0x14] sm:$0xf]  ;;  %v727_v8 = vld [vmem:[%s956_s3 + $0x70] sm:$0xff]  ;;  %v742_v20 = vld [vmem:[%s956_s3 + $0xe8] sm:$0xff] }
   0xe   :  { %76 = vst [vmem:[#allocation2 + $0xc] sm:$0xf] %v68_v32  ;;  %v70_v36 = vadd.f32 %v62_v35, %v54_v27  ;;  %v63_v37 = vld [vmem:[#allocation2 + $0x18] sm:$0xf]  ;;  %v736_v5 = vld [vmem:[%s956_s3 + $0xb8] sm:$0xff]  ;;  %v735_v11 = vld [vmem:[%s956_s3 + $0xb0] sm:$0xff] }
   0xf   :  { %77 = vst [vmem:[#allocation2 + $0x10] sm:$0xf] %v69_v34  ;;  %v71_v38 = vadd.f32 %v63_v37, %v55_v30  ;;  %v64_v39 = vld [vmem:[#allocation2 + $0x1c] sm:$0xf]  ;;  %v744_v6 = vld [vmem:[%s956_s3 + $0xf8] sm:$0xff]  ;;  %v743_v12 = vld [vmem:[%s956_s3 + $0xf0] sm:$0xff] }
  0x10   :  { %78 = vst [vmem:[#allocation2 + $0x14] sm:$0xf] %v70_v36  ;;  %v72_v40 = vadd.f32 %v64_v39, %v56_v33  ;;  %v717_v25 = vld [vmem:[%s956_s3 + $0x20] sm:$0xff]  ;;  %v879_v27 = vand.u32 127, %v160_v17  ;;  %vm174_vm4 = vcmask 1043459   ;;  %vm176_vm5 = vcmask 1044484  }
  0x11   :  { %79 = vst [vmem:[#allocation2 + $0x18] sm:$0xf] %v71_v38  ;;  %v187_v58 = vld.sshfl [vmem:[#allocation1] sm:$0xff pattern:$0x73625140]  ;;  %vm178_vm6 = vcmask 1045509  }
  0x12   :  { %v84_v41 = vld [vmem:[#allocation2] sm:$0xf]  ;;  %80 = vst [vmem:[#allocation2 + $0x1c] sm:$0xf] %v72_v40  ;;  %v196_v59 = vsel %vm195_vm1, %v187_v58, 0  ;;  %v725_v26 = vld [vmem:[%s956_s3 + $0x60] sm:$0xff] }
  0x13   :  { %v93_v42 = vsel %vm92_vm0, %v84_v41, 0.0  ;;  %v85_v46 = vld [vmem:[#allocation2 + $0x4] sm:$0xf]  ;;  %211 = vmatpush.bf16.msra.mxu0 %v196_v59  ;;  %v189_v62 = vld.sshfl [vmem:[#allocation1 + $0x10] sm:$0xff pattern:$0x73625140] }
  0x14   :  { %94 = vadd.xlane.f32.xlu0 %v93_v42  ;;  %v86_v43 = vld [vmem:[#allocation2 + $0x8] sm:$0xf]  ;;  %v96_v49 = vsel %vm92_vm0, %v85_v46, 0.0  ;;  %v188_v60 = vld.sshfl [vmem:[#allocation1 + $0x8] sm:$0xff pattern:$0x73625140] }
  0x15   :  { %v99_v44 = vsel %vm92_vm0, %v86_v43, 0.0  ;;  %v87_v48 = vld [vmem:[#allocation2 + $0xc] sm:$0xf]  ;;  %v198_v61 = vsel %vm195_vm1, %v188_v60, 0  ;;  %v200_v63 = vsel %vm195_vm1, %v189_v62, 0  ;;  %v733_v30 = vld [vmem:[%s956_s3 + $0xa0] sm:$0xff] }
  0x16   :  { %100 = vadd.xlane.f32.xlu1 %v99_v44  ;;  %v88_v45 = vld [vmem:[#allocation2 + $0x10] sm:$0xf]  ;;  %v102_v51 = vsel %vm92_vm0, %v87_v48, 0.0  ;;  %224 = vmatpush.bf16.msra.mxu1 %v198_v61  ;;  %v741_v31 = vld [vmem:[%s956_s3 + $0xe0] sm:$0xff]  ;;  %vm180_vm7 = vcmask 1046534   ;;  %vm182_vm8 = vcmask 1047559  }
  0x17   :  { %v105_v47 = vsel %vm92_vm0, %v88_v45, 0.0  ;;  %v89_v50 = vld [vmem:[#allocation2 + $0x14] sm:$0xf]  ;;  %237 = vmatpush.bf16.msra.mxu2 %v200_v63  ;;  %524 = vmatpush.bf16.msrb.mxu0 %v720_v2  ;;  %vm191_vm9 = vcmask 31744   ;;  %v738_v17 = vld [vmem:[%s956_s3 + $0xc8] sm:$0xff] }
  0x18   :  { %106 = vadd.xlane.f32.xlu2 %v105_v47  ;;  %v108_v52 = vsel %vm92_vm0, %v89_v50, 0.0  ;;  %v90_v53 = vld [vmem:[#allocation2 + $0x18] sm:$0xf]  ;;  %v190_v0 = vld.sshfl [vmem:[#allocation1 + $0x18] sm:$0xff pattern:$0x73625140] }
  0x19   :  { %v91_v54 = vld [vmem:[#allocation2 + $0x1c] sm:$0xf]  ;;  %v111_v55 = vsel %vm92_vm0, %v90_v53, 0.0  ;;  %v202_v1 = vsel %vm195_vm1, %v190_v0, 0  ;;  %v716_v40 = vld [vmem:[%s956_s3 + $0x18] sm:$0xff] }
  0x1a   :  { %v114_v56 = vsel %vm92_vm0, %v91_v54, 0.0  ;;  %250 = vmatpush.bf16.msra.mxu3 %v202_v1  ;;  %537 = vmatpush.bf16.msrb.mxu1 %v728_v3  ;;  %v724_v41 = vld [vmem:[%s956_s3 + $0x58] sm:$0xff] }
  0x1b   :  { %550 = vmatpush.bf16.msrb.mxu2 %v736_v5  ;;  %525 = vmatpush.bf16.msrb.mxu0 %v719_v7  ;;  %v732_v43 = vld [vmem:[%s956_s3 + $0x98] sm:$0xff] }
  0x1c   :  { %97 = vadd.xlane.f32.xlu0 %v96_v49  ;;  %v740_v44 = vld [vmem:[%s956_s3 + $0xd8] sm:$0xff] }
  0x1e   :  { %103 = vadd.xlane.f32.xlu1 %v102_v51  ;;  %563 = vmatpush.bf16.msrb.mxu3 %v744_v6 }
  0x1f   :  { %538 = vmatpush.bf16.msrb.mxu1 %v727_v8  ;;  %551 = vmatpush.bf16.msrb.mxu2 %v735_v11  ;;  %v722_v11 = vld [vmem:[%s956_s3 + $0x48] sm:$0xff] }
  0x20   :  { %109 = vadd.xlane.f32.xlu2 %v108_v52  ;;  %526 = vmatpush.bf16.msrb.mxu0 %v718_v15  ;;  %v721_v15 = vld [vmem:[%s956_s3 + $0x40] sm:$0xff] }
  0x22   :  { %564 = vmatpush.bf16.msrb.mxu3 %v743_v12  ;;  %v731_v12 = vld [vmem:[%s956_s3 + $0x90] sm:$0xff] }
  0x23   :  { %539 = vmatpush.bf16.msrb.mxu1 %v726_v16  ;;  %552 = vmatpush.bf16.msrb.mxu2 %v734_v19  ;;  %v730_v16 = vld [vmem:[%s956_s3 + $0x88] sm:$0xff]  ;;  %v737_v19 = vld [vmem:[%s956_s3 + $0xc0] sm:$0xff] }
  0x24   :  { %112 = vadd.xlane.f32.xlu0 %v111_v55  ;;  %527 = vmatpush.bf16.msrb.mxu0 %v717_v25  ;;  %v715_v55 = vld [vmem:[%s956_s3 + $0x10] sm:$0xff] }
  0x26   :  { %115 = vadd.xlane.f32.xlu1 %v114_v56  ;;  %565 = vmatpush.bf16.msrb.mxu3 %v742_v20  ;;  %v723_v56 = vld [vmem:[%s956_s3 + $0x50] sm:$0xff]  ;;  %v134_v20 = vld [vmem:[%s958_s2] sm:$0xf] }
  0x27   :  { %540 = vmatpush.bf16.msrb.mxu1 %v725_v26  ;;  %553 = vmatpush.bf16.msrb.mxu2 %v733_v30  ;;  %v139_v30 = vperm.slane %v134_v20, 3 }
  0x28   :  { %528 = vmatpush.bf16.msrb.mxu0 %v716_v40 }
  0x2a   :  { %566 = vmatpush.bf16.msrb.mxu3 %v741_v31 }
  0x2b   :  { %541 = vmatpush.bf16.msrb.mxu1 %v724_v41  ;;  %554 = vmatpush.bf16.msrb.mxu2 %v732_v43 }
  0x2c   :  { %529 = vmatpush.bf16.msrb.mxu0 %v715_v55 }
  0x2e   :  { %567 = vmatpush.bf16.msrb.mxu3 %v740_v44 }
  0x2f   :  { %542 = vmatpush.bf16.msrb.mxu1 %v723_v56  ;;  %555 = vmatpush.bf16.msrb.mxu2 %v731_v12 }
  0x33   :  { %543 = vmatpush.bf16.msrb.mxu1 %v722_v11  ;;  %556 = vmatpush.bf16.msrb.mxu2 %v730_v16 }
  0x37   :  { %544 = vmatpush.bf16.msrb.mxu1 %v721_v15 }
  0x87   :  { %v95_v4 = vpop.xlane.xlu0 %94 }
  0x88   :  { %v117_v9 = vmul.f32 0.00390625, %v95_v4 }
  0x89   :  { %v101_v10 = vpop.xlane.xlu1 %100 }
  0x8a   :  { %v119_v13 = vmul.f32 0.00390625, %v101_v10  ;;  %v125_v18 = vpack.c.bf16 %v117_v9, %v117_v9  ;;  %v714_v10 = vld [vmem:[%s956_s3 + $0x8] sm:$0xff] }
  0x8b   :  { %v107_v14 = vpop.xlane.xlu2 %106  ;;  %530 = vmatpush.bf16.msrb.mxu0 %v714_v10 }
  0x8c   :  { %v121_v21 = vmul.f32 0.00390625, %v107_v14  ;;  %v127_v22 = vpack.c.bf16 %v119_v13, %v119_v13  ;;  %v152_v28 = vunpack.c.l.b16 %v125_v18  ;;  %v739_v13 = vld [vmem:[%s956_s3 + $0xd0] sm:$0xff]  ;;  %v713_v14 = vld [vmem:[%s956_s3] sm:$0xff] }
  0x8d   :  { %568 = vmatpush.bf16.msrb.mxu3 %v739_v13  ;;  %v729_v18 = vld [vmem:[%s956_s3 + $0x80] sm:$0xff] }
  0x8e   :  { %v129_v32 = vpack.c.bf16 %v121_v21, %v121_v21  ;;  %v154_v35 = vunpack.c.l.b16 %v127_v22  ;;  %v162_v42 = vperm.slane %v152_v28, %v879_v27  ;;  %557 = vmatpush.bf16.msrb.mxu2 %v729_v18  ;;  %v136_v21 = vperm.slane %v134_v20, 0 }
  0x8f   :  { %v98_v23 = vpop.xlane.xlu0 %97  ;;  %531 = vmatpush.bf16.msrb.mxu0 %v713_v14  ;;  %v137_v22 = vperm.slane %v134_v20, 1 }
  0x90   :  { %v118_v24 = vmul.f32 0.00390625, %v98_v23  ;;  %v156_v45 = vunpack.c.l.b16 %v129_v32  ;;  %v164_v49 = vperm.slane %v154_v35, %v879_v27 }
  0x91   :  { %v104_v29 = vpop.xlane.xlu1 %103  ;;  %569 = vmatpush.bf16.msrb.mxu3 %v738_v17 }
  0x92   :  { %v126_v33 = vpack.c.bf16 %v118_v24, %v118_v24  ;;  %v120_v34 = vmul.f32 0.00390625, %v104_v29  ;;  %v166_v59 = vperm.slane %v156_v45, %v879_v27  ;;  %v138_v29 = vperm.slane %v134_v20, 2 }
  0x93   :  { %v110_v36 = vpop.xlane.xlu2 %109 }
  0x94   :  { %v153_v37 = vunpack.c.l.b16 %v126_v33  ;;  %v128_v38 = vpack.c.bf16 %v120_v34, %v120_v34  ;;  %v122_v39 = vmul.f32 0.00390625, %v110_v36 }
  0x95   :  { %570 = vmatpush.bf16.msrb.mxu3 %v737_v19 }
  0x96   :  { %v163_v46 = vperm.slane %v153_v37, %v879_v27  ;;  %v155_v47 = vunpack.c.l.b16 %v128_v38  ;;  %v130_v48 = vpack.c.bf16 %v122_v39, %v122_v39 }
  0x97   :  { %v113_v50 = vpop.xlane.xlu0 %112 }
  0x98   :  { %v171_v51 = vsel %vm170_vm2, %v163_v46, %v162_v42  ;;  %v165_v52 = vperm.slane %v155_v47, %v879_v27  ;;  %v157_v53 = vunpack.c.l.b16 %v130_v48  ;;  %v123_v54 = vmul.f32 0.00390625, %v113_v50  ;;  %v746_v47 = vld [vmem:[%s957_s4] ss:$0 sm:$0xff] }
  0x99   :  { %v173_v57 = vsel %vm172_vm3, %v164_v49, %v171_v51  ;;  %v116_v58 = vpop.xlane.xlu1 %115 }
  0x9a   :  { %v175_v60 = vsel %vm174_vm4, %v165_v52, %v173_v57  ;;  %v131_v61 = vpack.c.bf16 %v123_v54, %v123_v54  ;;  %v124_v62 = vmul.f32 0.00390625, %v116_v58  ;;  %v167_v63 = vperm.slane %v157_v53, %v879_v27 }
  0x9b   :  { %v177_v0 = vsel %vm176_vm5, %v166_v59, %v175_v60 }
  0x9c   :  { %v158_v1 = vunpack.c.l.b16 %v131_v61  ;;  %v132_v2 = vpack.c.bf16 %v124_v62, %v124_v62  ;;  %v179_v5 = vsel %vm178_vm6, %v167_v63, %v177_v0 }
  0x9e   :  { %v168_v3 = vperm.slane %v158_v1, %v879_v27  ;;  %v159_v4 = vunpack.c.l.b16 %v132_v2 }
  0xa0   :  { %v181_v6 = vsel %vm180_vm7, %v168_v3, %v179_v5  ;;  %v169_v7 = vperm.slane %v159_v4, %v879_v27 }
  0xa2   :  { %v183_v8 = vsel %vm182_vm8, %v169_v7, %v181_v6 }
  0xa3   :  { %v184_v9 = vpack.c.b16 %v183_v8, %v183_v8 }
  0xa5   :  { %581 = vmatmul.msk.bf16.vlgmr.msra.gmra.mxu0 %vm191_vm9, %v184_v9  ;;  %582 = vmatmul.msk.bf16.vlgmr.msra.gmra.mxu1 %vm191_vm9, %v184_v9 }
  0xa6   :  { %583 = vmatmul.msk.bf16.vlgmr.msra.gmra.mxu2 %vm191_vm9, %v184_v9  ;;  %584 = vmatmul.msk.bf16.vlgmr.msra.gmra.mxu3 %vm191_vm9, %v184_v9 }
 0x122   :  { %v213_v23 = vpop.f32.mrf.mxu0  ;;  %v226_v24 = vpop.f32.mrf.mxu1 }
 0x123   :  { %v214_v25 = vadd.f32 %v213_v23, %v136_v21  ;;  %v227_v26 = vadd.f32 %v226_v24, %v137_v22 }
 0x125   :  { %v256_v27 = vmax.f32 %v214_v25, 0.0  ;;  %v257_v28 = vmax.f32 %v227_v26, 0.0 }
 0x127   :  { %v260_v31 = vpack.c.bf16 %v256_v27, %v256_v27  ;;  %v261_v32 = vpack.c.bf16 %v257_v28, %v257_v28 }
 0x129   :  { %v239_v33 = vpop.f32.mrf.mxu2  ;;  %v252_v34 = vpop.f32.mrf.mxu3  ;;  %532 = vmatmul.bf16.vlgmr.msrb.gmra.mxu0 %v260_v31  ;;  %545 = vmatmul.bf16.vlgmr.msrb.gmra.mxu1 %v261_v32 }
 0x12a   :  { %v240_v35 = vadd.f32 %v239_v33, %v138_v29  ;;  %v253_v36 = vadd.f32 %v252_v34, %v139_v30  ;;  %v215_v37 = vpop.f32.mrf.mxu0  ;;  %v228_v38 = vpop.f32.mrf.mxu1 }
 0x12c   :  { %v258_v39 = vmax.f32 %v240_v35, 0.0  ;;  %v259_v40 = vmax.f32 %v253_v36, 0.0 }
 0x12e   :  { %v262_v41 = vpack.c.bf16 %v258_v39, %v258_v39  ;;  %v263_v42 = vpack.c.bf16 %v259_v40, %v259_v40 }
 0x130   :  { %558 = vmatmul.bf16.vlgmr.msrb.gmra.mxu2 %v262_v41  ;;  %571 = vmatmul.bf16.vlgmr.msrb.gmra.mxu3 %v263_v42 }
 0x131   :  { %v241_v43 = vpop.f32.mrf.mxu2  ;;  %v254_v44 = vpop.f32.mrf.mxu3 }
 0x1a6   :  { %v533_v45 = vpop.f32.mrf.mxu0  ;;  %v546_v46 = vpop.f32.mrf.mxu1 }
 0x1a7   :  { %v534_v48 = vadd.f32 %v746_v47, %v533_v45 }
 0x1a9   :  { %v547_v51 = vadd.f32 %v546_v46, %v534_v48 }
 0x1ae   :  { %v535_v49 = vpop.f32.mrf.mxu0  ;;  %v548_v50 = vpop.f32.mrf.mxu1 }
 0x1b3   :  { %v559_v52 = vpop.f32.mrf.mxu2  ;;  %v572_v53 = vpop.f32.mrf.mxu3 }
 0x1b4   :  { %v560_v54 = vadd.f32 %v559_v52, %v547_v51 }
 0x1b6   :  { %v573_v55 = vadd.f32 %v572_v53, %v560_v54 }
 0x1b8   :  { %576 = vst [vmem:[%s959_s5] sm:$0xff] %v573_v55 }
 0x1bb   :  { %v561_v56 = vpop.f32.mrf.mxu2  ;;  %v574_v57 = vpop.f32.mrf.mxu3 }

</bundles_post_ra>
